<compile_context>
chip_gen: v6e
topology: v6e:2x2x1
jax: 0.10.0
libtpu: 0.0.40
codegen_flags: <defaults>
</compile_context>

<pallas_src>
import math
from functools import lru_cache

import numpy as np
import jax
import jax.numpy as jnp
from jax.experimental import pallas as pl
from jax.experimental.pallas import tpu as pltpu


COMPUTE_DTYPE = jnp.bfloat16      # MXU operands AND kernel outputs (f32 accumulation inside)


# --------------------------- hardware-derived knobs ---------------------------

_VMEM_LIMIT = None


def _vmem_limit_bytes():
    """Half of per-core VMEM, clamped to [32 MiB, 64 MiB]; 32 MiB fallback."""
    global _VMEM_LIMIT
    if _VMEM_LIMIT is None:
        limit = 32 * 1024 * 1024
        try:
            info = pltpu.get_tpu_info()
            cap = getattr(info, "vmem_capacity_bytes", None)
            if cap:
                limit = int(min(max(cap // 2, 32 * 1024 * 1024), 64 * 1024 * 1024))
        except Exception:
            pass
        _VMEM_LIMIT = limit
    return _VMEM_LIMIT


def _spec(block_shape, index_map, buffers=None):
    """BlockSpec helper; buffers=1 single-buffers grid-invariant operands."""
    if buffers is not None:
        try:
            return pl.BlockSpec(block_shape, index_map, pipeline_mode=pl.Buffered(buffers))
        except Exception:           # older API without pipeline_mode: fall back
            pass
    return pl.BlockSpec(block_shape, index_map)


def _choose_spatial_tile(p_out, target=2048):
    """Largest multiple of 128 <= target that divides p_out (or p_out itself)."""
    if p_out <= target:
        return p_out
    for tp in range(target, 127, -128):
        if p_out % tp == 0:
            return tp
    return p_out


# ----------------------------- Pallas kernels --------------------------------

def _proj_kernel(x_ref, w_ref, b_ref, o_ref):
    """1x1 conv, identity spatial path (output size == input size).

    x_ref: (1, Cin, S)   channels on sublanes, flattened spatial on lanes
    w_ref: (Cout, Cin)
    b_ref: (Cout, 1)     f32 bias
    o_ref: (1, Cout, S)  flattened NCHW
    """
    z = jnp.dot(w_ref[...], x_ref[0], preferred_element_type=jnp.float32)
    o_ref[0] = (z + b_ref[...]).astype(o_ref.dtype)


def _proj_batched_kernel(x_ref, w_ref, b_ref, o_ref):
    """1x1 conv with the batch folded into the lane axis (lane-dense store).

    x_ref: (Cin, N*S)
    w_ref: (Cout, Cin)
    b_ref: (Cout, 1)     f32 bias
    o_ref: (Cout, N*S)
    """
    z = jnp.dot(w_ref[...], x_ref[...], preferred_element_type=jnp.float32)
    o_ref[...] = (z + b_ref[...]).astype(o_ref.dtype)


def _proj_resize_kernel(x_ref, w_ref, b_ref, k_ref, o_ref):
    """Fused 1x1 conv + bilinear resize (align_corners=True); one (sample, P-tile).

    x_ref: (1, Cin, S)        S = h*w source spatial
    w_ref: (Cout, Cin)
    b_ref: (Cout, 1)          f32 bias
    k_ref: (S, TP)            slab of fused interpolation matrix kron(A,B)^T
    o_ref: (1, Cout, TP)      flattened-NCHW output tile (lane-dense store)
    """
    # Tiny (Cout,S) conv recomputed per P-tile: MXU has slack, writeback is the
    # bottleneck, so recompute beats carrying a cross-step accumulator.
    z = jnp.dot(w_ref[...], x_ref[0], preferred_element_type=jnp.float32)
    z = (z + b_ref[...]).astype(k_ref.dtype)
    o_ref[0] = jnp.dot(z, k_ref[...],
                       preferred_element_type=jnp.float32).astype(o_ref.dtype)


# --------------------- precomputed interpolation matrices --------------------

def _np_interp_matrix(out_size, in_size):
    """1-D matrix reproducing F.interpolate(mode='bilinear', align_corners=True)."""
    p = np.arange(out_size, dtype=np.float64)
    scale = (in_size - 1) / max(out_size - 1, 1)
    src = p * scale
    i0 = np.clip(np.floor(src).astype(np.int64), 0, in_size - 1)
    i1 = np.minimum(i0 + 1, in_size - 1)
    frac = src - i0
    m = np.zeros((out_size, in_size), dtype=np.float64)
    m[np.arange(out_size), i0] += 1.0 - frac
    m[np.arange(out_size), i1] += frac
    return m


@lru_cache(maxsize=None)
def _interp_kron(out_hw, in_hw):
    """Fused interpolation matrix, built once on host directly in (s, p_out) orientation."""
    (hout, wout), (h, w) = out_hw, in_hw
    a = _np_interp_matrix(hout, h)          # (Hout, h)
    b = _np_interp_matrix(wout, w)          # (Wout, w)
    k = np.kron(a.T, b.T)                   # (h*w, Hout*Wout) == kron(a, b).T
    return jnp.asarray(k.astype(np.float32)).astype(COMPUTE_DTYPE)


# ----------------------------- wrappers ---------------------------------------

def conv1x1(x_nchw, w, b):
    """1x1 conv, no resize.  x: (N,Cin,H,W), w: (Cout,Cin), b: (Cout,) -> (N,Cout,H,W)."""
    n, cin, h, wd = x_nchw.shape
    cout = w.shape[0]
    s = h * wd
    xf = x_nchw.reshape(n, cin, s).astype(COMPUTE_DTYPE)      # free metadata reshape
    out = pl.pallas_call(
        _proj_kernel,
        out_shape=jax.ShapeDtypeStruct((n, cout, s), COMPUTE_DTYPE),
        grid_spec=pltpu.PrefetchScalarGridSpec(
            num_scalar_prefetch=0,
            grid=(n,),
            in_specs=[
                pl.BlockSpec((1, cin, s), lambda i: (i, 0, 0)),
                _spec((cout, cin), lambda i: (0, 0), buffers=1),
                _spec((cout, 1), lambda i: (0, 0), buffers=1),
            ],
            out_specs=pl.BlockSpec((1, cout, s), lambda i: (i, 0, 0)),
        ),
        compiler_params=pltpu.CompilerParams(
            dimension_semantics=("parallel",),
            vmem_limit_bytes=_vmem_limit_bytes(),
        ),
    )(xf, w.astype(COMPUTE_DTYPE), b.reshape(cout, 1).astype(jnp.float32))
    return out.reshape(n, cout, h, wd)


def conv1x1_batched(x_cf, w, b):
    """1x1 conv on a channel-first, batch-folded map.  x_cf: (Cin, N*S) -> (Cout, N*S).

    Single grid step; the lane dim is N*S >= 128 so the store is unmasked/dense.
    """
    cin, l = x_cf.shape
    cout = w.shape[0]
    return pl.pallas_call(
        _proj_batched_kernel,
        out_shape=jax.ShapeDtypeStruct((cout, l), COMPUTE_DTYPE),
        grid_spec=pltpu.PrefetchScalarGridSpec(
            num_scalar_prefetch=0,
            grid=(1,),
            in_specs=[
                pl.BlockSpec((cin, l), lambda i: (0, 0)),
                pl.BlockSpec((cout, cin), lambda i: (0, 0)),
                pl.BlockSpec((cout, 1), lambda i: (0, 0)),
            ],
            out_specs=pl.BlockSpec((cout, l), lambda i: (0, 0)),
        ),
        compiler_params=pltpu.CompilerParams(
            dimension_semantics=("arbitrary",),
            vmem_limit_bytes=_vmem_limit_bytes(),
        ),
    )(x_cf.astype(COMPUTE_DTYPE), w.astype(COMPUTE_DTYPE),
      b.reshape(cout, 1).astype(jnp.float32))


def conv1x1_bilinear(x_nchw, w, b, out_hw):
    """interpolate(Conv2d_1x1(x), out_hw, mode='bilinear', align_corners=True).

    x: (N,Cin,H,W); w: (Cout,Cin); b: (Cout,) -> (N,Cout,Hout,Wout) in bf16.
    """
    n, cin, h, wd = x_nchw.shape
    cout = w.shape[0]
    hout, wout = out_hw
    if (hout, wout) == (h, wd):              # identity fast path: interp is a no-op
        return conv1x1(x_nchw, w, b)

    s = h * wd
    p_out = hout * wout
    tp = _choose_spatial_tile(p_out)         # output-spatial tile, multiple of 128
    jn = p_out // tp
    xf = x_nchw.reshape(n, cin, s).astype(COMPUTE_DTYPE)
    k = _interp_kron((hout, wout), (h, wd))  # (s, p_out) bf16, cached host constant

    out = pl.pallas_call(
        _proj_resize_kernel,
        out_shape=jax.ShapeDtypeStruct((n, cout, p_out), COMPUTE_DTYPE),
        grid_spec=pltpu.PrefetchScalarGridSpec(
            num_scalar_prefetch=0,
            grid=(n, jn),
            in_specs=[
                pl.BlockSpec((1, cin, s), lambda i, j: (i, 0, 0)),
                _spec((cout, cin), lambda i, j: (0, 0), buffers=1),   # grid-invariant
                _spec((cout, 1), lambda i, j: (0, 0), buffers=1),     # grid-invariant
                pl.BlockSpec((s, tp), lambda i, j: (0, j)),           # K slab per P-tile
            ],
            out_specs=pl.BlockSpec((1, cout, tp), lambda i, j: (i, 0, j)),
        ),
        compiler_params=pltpu.CompilerParams(
            # Both axes independent -> both v7x TensorCores busy even at N==1,
            # and per-core pipelining hides the dominant output writeback.
            dimension_semantics=("parallel", "parallel"),
            vmem_limit_bytes=_vmem_limit_bytes(),
        ),
    )(xf, w.astype(COMPUTE_DTYPE), b.reshape(cout, 1).astype(jnp.float32), k)
    return out.reshape(n, cout, hout, wout)   # free metadata reshape in XLA


# ------------------------- GameNet configuration -----------------------------

HIDDEN = 32                                    # surrogate for config.hidden_size (ViT-L: 1024)
GRID = 8                                       # surrogate patch grid (ViT-L_16@224 would be 14)
CONV_OUT = (512, 256, 64)                      # GameNet self.conv output channels (exact)
MID_TMP_HW = ((32, 32), (64, 64), (128, 128))  # hardcoded interpolate target sizes (exact)


def _uniform(key, shape, fan_in):
    bound = 1.0 / math.sqrt(fan_in)
    return jax.random.uniform(key, shape, jnp.float32, -bound, bound)


def init_params(key):
    ks = iter(jax.random.split(key, 32))
    p = {}
    # GameNet.conv: three 1x1 convs, hidden_size -> (512, 256, 64); weights stored (Cout, Cin)
    p['conv_w'] = [_uniform(next(ks), (c, HIDDEN), HIDDEN) for c in CONV_OUT]
    p['conv_b'] = [_uniform(next(ks), (c,), HIDDEN) for c in CONV_OUT]
    # TODO(synk): Transformer backbone code not provided; stubbed as patchify + 1x1 projections.
    p['vit_feat_w'] = _uniform(next(ks), (HIDDEN, 3), 3)
    p['vit_feat_b'] = _uniform(next(ks), (HIDDEN,), 3)
    p['vit_mid_w'] = [_uniform(next(ks), (HIDDEN, 3), 3) for _ in range(3)]
    p['vit_mid_b'] = [_uniform(next(ks), (HIDDEN,), 3) for _ in range(3)]
    # TODO(synk): ResNetV2 backbone code not provided; stubbed likewise.
    p['res_feat_w'] = _uniform(next(ks), (HIDDEN, 3), 3)
    p['res_feat_b'] = _uniform(next(ks), (HIDDEN,), 3)
    p['res_mid_w'] = [_uniform(next(ks), (c, 3), 3) for c in CONV_OUT]
    p['res_mid_b'] = [_uniform(next(ks), (c,), 3) for c in CONV_OUT]
    return p


def _patchify(x_nchw, grid):
    """Average-pool NCHW input down to a (grid x grid) token map (plain-JAX glue)."""
    n, c, h, w = x_nchw.shape
    x = x_nchw.reshape(n, c, grid, h // grid, grid, w // grid)
    return x.mean(axis=(3, 5))                                     # (N, C, grid, grid)


# ------------------------------ forward pass ---------------------------------

def game_net_forward(params, x):
    """GameNet.forward.  x: (N, C, H, W) NCHW, as in the PyTorch reference."""
    if x.shape[1] == 1:
        x = jnp.tile(x, (1, 3, 1, 1))                              # x.repeat(1, 3, 1, 1)
    n = x.shape[0]
    s = GRID * GRID

    # Shared patchified token map used by both backbone stubs.
    xp = _patchify(x, GRID)                                        # (N, 3, GRID, GRID)

    # --- fused launch #1: all five GRID->GRID 1x1 projections in one kernel ---
    #     [vit feature, vit mid0, vit mid1, vit mid2, resnet feature]
    #     Batch is folded into the lane axis so the store is >=128 lanes dense.
    w_all = jnp.concatenate([params['vit_feat_w']] + params['vit_mid_w']
                            + [params['res_feat_w']], axis=0)      # (5*HIDDEN, 3)
    b_all = jnp.concatenate([params['vit_feat_b']] + params['vit_mid_b']
                            + [params['res_feat_b']], axis=0)      # (5*HIDDEN,)
    xp_cf = xp.transpose(1, 0, 2, 3).reshape(3, n * s)             # tiny wrapper-side relayout
    proj_cf = conv1x1_batched(xp_cf, w_all, b_all)                 # (5*HIDDEN, N*S) bf16
    proj = proj_cf.reshape(5 * HIDDEN, n, GRID, GRID).transpose(1, 0, 2, 3)

    vit_feature = proj[:, 0:HIDDEN]                                # backbone(x) feature
    mid = [proj[:, (i + 1) * HIDDEN:(i + 2) * HIDDEN] for i in range(3)]
    res_feature = proj[:, 4 * HIDDEN:5 * HIDDEN]                   # backbone2(x) feature

    feature = jnp.concatenate([vit_feature, res_feature], axis=1)  # torch.cat dim=1
    fea_lst = [feature] + list(mid)

    # --- fused launches #2-#4: per scale, interpolate(conv[i](mid[i])) and mid2[i]
    #     (both sourced at GRID x GRID, both resized to MID_TMP_HW[i]) are computed
    #     in ONE kernel via a block-diagonal weight, producing the channel-
    #     concatenated mid_tmp[i] = cat([conv_up, mid2[i]], dim=1) directly. ---
    mid_tmp = []
    for i in range(3):
        ci = CONV_OUT[i]
        wc = params['conv_w'][i]                                   # (ci, HIDDEN)
        wr = params['res_mid_w'][i]                                # (ci, 3)
        w_blk = jnp.concatenate([
            jnp.concatenate([wc, jnp.zeros((ci, 3), wc.dtype)], axis=1),
            jnp.concatenate([jnp.zeros((ci, HIDDEN), wr.dtype), wr], axis=1),
        ], axis=0)                                                 # (2*ci, HIDDEN+3)
        b_blk = jnp.concatenate([params['conv_b'][i], params['res_mid_b'][i]], axis=0)
        x_blk = jnp.concatenate([mid[i].astype(jnp.float32),
                                 xp], axis=1)                      # (N, HIDDEN+3, GRID, GRID)
        mid_tmp.append(conv1x1_bilinear(x_blk, w_blk, b_blk, MID_TMP_HW[i]))

    # TODO(synk): UNet decoder code not provided in the reference; return the
    # decoder inputs (feature, mid_tmp) in place of its output `y`.
    y = (feature, mid_tmp)
    return y, fea_lst


if __name__ == "__main__":
    key = jax.random.PRNGKey(0)
    pkey, xkey = jax.random.split(key)
    params = init_params(pkey)

    # single-channel input to exercise the repeat(1, 3, 1, 1) branch
    x = jax.random.normal(xkey, (2, 1, 16, 16), jnp.float32)

    (y_feature, y_mid_tmp), fea_lst = game_net_forward(params, x)
    jax.block_until_ready((y_feature, y_mid_tmp, fea_lst))

    print("KERNEL_OK")
</pallas_src>

<mosaic_0001>
module attributes {stable_mosaic.version = 11 : i64} {
  func.func @_proj_batched_kernel(%arg0: i32, %arg1: memref<3x128xbf16, #tpu.memory_space<vmem>>, %arg2: memref<160x3xbf16, #tpu.memory_space<vmem>>, %arg3: memref<160x1xf32, #tpu.memory_space<vmem>>, %arg4: memref<160x128xbf16, #tpu.memory_space<vmem>>) attributes {dimension_semantics = [#tpu.dimension_semantics<arbitrary>], iteration_bounds = array<i64: 1>, scalar_prefetch = 0 : i64, scratch_operands = 0 : i64, tpu.core_type = #tpu.core_type<tc>, window_params = [{pipeline_mode = #tpu.pipeline_mode<synchronous>, transform_indices = @transform_0, window_bounds = array<i64: 3, 128>}, {pipeline_mode = #tpu.pipeline_mode<synchronous>, transform_indices = @transform_1, window_bounds = array<i64: 160, 3>}, {pipeline_mode = #tpu.pipeline_mode<synchronous>, transform_indices = @transform_2, window_bounds = array<i64: 160, 1>}, {pipeline_mode = #tpu.pipeline_mode<synchronous>, transform_indices = @transform_3, window_bounds = array<i64: 160, 128>}]} {
    %c0 = arith.constant 0 : index
    %c0_0 = arith.constant 0 : index
    %0 = vector.load %arg2[%c0, %c0_0] : memref<160x3xbf16, #tpu.memory_space<vmem>>, vector<160x3xbf16>
    %c0_1 = arith.constant 0 : index
    %c0_2 = arith.constant 0 : index
    %1 = vector.load %arg1[%c0_1, %c0_2] : memref<3x128xbf16, #tpu.memory_space<vmem>>, vector<3x128xbf16>
    %cst = arith.constant dense<0.000000e+00> : vector<160x128xf32>
    %2 = tpu.matmul %0, %1, %cst {dimension_numbers = #tpu.dot_dimension_numbers<[1], [0], [0], [1], [0, 0, 1, 1], [], []>} : vector<160x3xbf16>, vector<3x128xbf16>, vector<160x128xf32> -> vector<160x128xf32>
    %c0_3 = arith.constant 0 : index
    %c0_4 = arith.constant 0 : index
    %3 = vector.load %arg3[%c0_3, %c0_4] : memref<160x1xf32, #tpu.memory_space<vmem>>, vector<160x1xf32>
    %4 = vector.broadcast %3 : vector<160x1xf32> to vector<160x128xf32>
    %5 = arith.addf %2, %4 : vector<160x128xf32>
    %6 = arith.truncf %5 : vector<160x128xf32> to vector<160x128xbf16>
    %c0_5 = arith.constant 0 : index
    %c0_6 = arith.constant 0 : index
    %7 = vector.load %arg4[%c0_5, %c0_6] : memref<160x128xbf16, #tpu.memory_space<vmem>>, vector<160x128xbf16>
    tpu.vector_store %arg4[%c0_5, %c0_6], %6 {strides = array<i32>} : memref<160x128xbf16, #tpu.memory_space<vmem>>, vector<160x128xbf16>,
    return
  }
  func.func @transform_0(%arg0: i32) -> (i32, i32) {
    %c0_i32 = arith.constant 0 : i32
    %c0_i32_0 = arith.constant 0 : i32
    %c0_i32_1 = arith.constant 0 : i32
    return %c0_i32, %c0_i32_0 : i32, i32
  }
  func.func @transform_1(%arg0: i32) -> (i32, i32) {
    %c0_i32 = arith.constant 0 : i32
    %c0_i32_0 = arith.constant 0 : i32
    %c0_i32_1 = arith.constant 0 : i32
    return %c0_i32, %c0_i32_0 : i32, i32
  }
  func.func @transform_2(%arg0: i32) -> (i32, i32) {
    %c0_i32 = arith.constant 0 : i32
    %c0_i32_0 = arith.constant 0 : i32
    %c0_i32_1 = arith.constant 0 : i32
    return %c0_i32, %c0_i32_0 : i32, i32
  }
  func.func @transform_3(%arg0: i32) -> (i32, i32) {
    %c0_i32 = arith.constant 0 : i32
    %c0_i32_0 = arith.constant 0 : i32
    %c0_i32_1 = arith.constant 0 : i32
    return %c0_i32, %c0_i32_0 : i32, i32
  }
}

</mosaic_0001>

<bundles_post_ra>
// kernel: tpu_custom_call.1
= control target key start
LH: loop header
LB: loop body
LE: loop exit
PB: predicated region body
PF: predicated region fallthrough
CT: control target
= control target key end

     0   :  { %vm238_vm0 = vcmask 1040384   ;;  %vm239_vm1 = vcmask 1041408   ;;  %v667_v2 = vmov 65535   ;;  %vm207_vm2 = vcmask 23552   ;;  %s804_s0 = inlined_call_operand.vmem [shape: bf16[3,128], index: 0, kind: input, shape index: {}]   ;;  %s805_s1 = inlined_call_operand.vmem [shape: bf16[160,3], index: 1, kind: input, shape index: {}]   ;;  %s806_s2 = inlined_call_operand.vmem [shape: f32[160,1], index: 2, kind: input, shape index: {}]   ;;  %s807_s3 = inlined_call_operand.hbm [shape: bf16[160,128], index: 3, kind: output, shape index: {}]  }
   0x1   :  { %v36_v0 = vld [vmem:[%s804_s0] sm:$0x3]  ;;  %v240_v3 = vsel %vm238_vm0, 4294967295, %v667_v2  ;;  %v636_v5 = vld [vmem:[%s805_s1 + $0x30] sm:$0xff]   ;;  %v637_v7 = vld [vmem:[%s805_s1 + $0x8] sm:$0xff]   ;;  %v668_v9 = vmov 0  }
   0x2   :  { %v635_v1 = vld [vmem:[%s805_s1] sm:$0xff]   ;;  %v241_v4 = vsel %vm239_vm1, %v240_v3, 0  ;;  %618 = vmatprep.mubr.msk.bf16.mxu1 %vm207_vm2, %v636_v5  ;;  %v638_v8 = vld [vmem:[%s805_s1 + $0x38] sm:$0xff]   ;;  %634 = vset.pattern.permute.xlu1 %v668_v9  ;;  %v639_v10 = vld [vmem:[%s805_s1 + $0x10] sm:$0xff]  }
   0x3   :  { %606 = vmatprep.mubr.msk.bf16.mxu0 %vm207_vm2, %v635_v1  ;;  %v243_v6 = vand.u32 %v241_v4, %v36_v0  ;;  %v640_v11 = vld [vmem:[%s805_s1 + $0x40] sm:$0xff]   ;;  %633 = vset.pattern.permute.xlu0 %v668_v9  ;;  %v39_v12 = vld [vmem:[%s806_s2 + $0x10] sm:$0xff]  ;;  %v641_v14 = vld [vmem:[%s805_s1 + $0x18] sm:$0xff]  }
   0x4   :  { %v37_v13 = vld [vmem:[%s806_s2] sm:$0xff]  ;;  %69 = vperm.xlu1 %634, %v39_v12   ;;  %v642_v15 = vld [vmem:[%s805_s1 + $0x48] sm:$0xff]   ;;  %v40_v16 = vld [vmem:[%s806_s2 + $0x18] sm:$0xff] }
   0x5   :  { %604 = vmatprep.subr.bf16.mxu0 %v243_v6  ;;  %626 = vmatprep.subr.bf16.mxu1 %v243_v6  ;;  %v38_v17 = vld [vmem:[%s806_s2 + $0x8] sm:$0xff]  ;;  %v643_v18 = vld [vmem:[%s805_s1 + $0x20] sm:$0xff]  }
   0x6   :  { %605 = vmatpush3.bf16.msra.mxu0 %v243_v6  ;;  %627 = vmatpush3.bf16.msra.mxu1 %v243_v6  ;;  %v42_v19 = vld [vmem:[%s806_s2 + $0x28] sm:$0xff]  ;;  %v41_v20 = vld [vmem:[%s806_s2 + $0x20] sm:$0xff] }
   0x7   :  { %59 = vperm.xlu0 %633, %v37_v13  }
   0x8   :  { %74 = vperm.xlu1 %634, %v40_v16  }
   0x9   :  { %607 = vmatmul.mubr.msk.bf16.vlgmr.msra.gmra.mxu0 %vm207_vm2, %v637_v7  ;;  %619 = vmatmul.mubr.msk.bf16.vlgmr.msra.gmra.mxu1 %vm207_vm2, %v638_v8 }
   0xa   :  { %610 = vmatprep.mubr.msk.bf16.mxu0 %vm207_vm2, %v639_v10  ;;  %622 = vmatprep.mubr.msk.bf16.mxu1 %vm207_vm2, %v640_v11 }
   0xb   :  { %64 = vperm.xlu0 %633, %v38_v17  }
  0x11   :  { %611 = vmatmul.mubr.msk.bf16.gmra.mxu0 %vm207_vm2, %v641_v14  ;;  %623 = vmatmul.mubr.msk.bf16.gmra.mxu1 %vm207_vm2, %v642_v15 }
  0x12   :  { %8 = vsyncpa [#allocation3], 0  ;;  %614 = vmatprep.mubr.msk.bf16.mxu0 %vm207_vm2, %v643_v18  ;;  %84 = vperm.xlu1 %634, %v42_v19   ;;  %v644_v21 = vld [vmem:[%s805_s1 + $0x28] sm:$0xff]   ;;  %v44_v22 = vld [vmem:[%s806_s2 + $0x38] sm:$0xff] }
  0x13   :  { %79 = vperm.xlu0 %633, %v41_v20   ;;  %v43_v23 = vld [vmem:[%s806_s2 + $0x30] sm:$0xff]  ;;  %v46_v24 = vld [vmem:[%s806_s2 + $0x48] sm:$0xff]  ;;  %v45_v25 = vld [vmem:[%s806_s2 + $0x40] sm:$0xff] }
  0x14   :  { %v48_v26 = vld [vmem:[%s806_s2 + $0x58] sm:$0xff]  ;;  %v47_v27 = vld [vmem:[%s806_s2 + $0x50] sm:$0xff]  ;;  %v50_v28 = vld [vmem:[%s806_s2 + $0x68] sm:$0xff] }
  0x15   :  { %v49_v29 = vld [vmem:[%s806_s2 + $0x60] sm:$0xff]  ;;  %v52_v30 = vld [vmem:[%s806_s2 + $0x78] sm:$0xff]  ;;  %v51_v31 = vld [vmem:[%s806_s2 + $0x70] sm:$0xff] }
  0x16   :  { %94 = vperm.xlu1 %634, %v44_v22   ;;  %v54_v32 = vld [vmem:[%s806_s2 + $0x88] sm:$0xff]  ;;  %v53_v33 = vld [vmem:[%s806_s2 + $0x80] sm:$0xff]  ;;  %v56_v34 = vld [vmem:[%s806_s2 + $0x98] sm:$0xff] }
  0x17   :  { %89 = vperm.xlu0 %633, %v43_v23   ;;  %v55_v35 = vld [vmem:[%s806_s2 + $0x90] sm:$0xff]  ;;  %s669_s2 = smov [#allocation2]  }
  0x18   :  { %s463_s17 = sshll.u32 %s669_s2, 4  ;;  %s464_s17 = int_to_ptr.vmem [resolvable:$true] %s463_s17 }
  0x19   :  { %615 = vmatmul.mubr.msk.bf16.gmra.mxu0 %vm207_vm2, %v644_v21  ;;  %s645_s18 = scalar_lea.vmem %s464_s17, 1280  ;;  %p650_p1 = scmp.lt.s32.totalorder %s464_s17, %s464_s17 }
  0x1a   :  { %104 = vperm.xlu1 %634, %v46_v24   ;;  %p646_p0 = scmp.ne.s32.totalorder %s464_s17, %s645_s18  ;;  %p651_p2 = scmp.lt.s32.totalorder %s645_s18, %s645_s18 }
  0x1b   :  { %99 = vperm.xlu0 %633, %v45_v25  }
  0x1c   :  { %p652_p3 = por %p651_p2, %p650_p1 }
  0x1e   :  { %114 = vperm.xlu1 %634, %v48_v26   ;;  %p653_p4 = pnand %p652_p3, %p646_p0 }
  0x1f   :  { %109 = vperm.xlu0 %633, %v47_v27  }
  0x22   :  { %124 = vperm.xlu1 %634, %v50_v28  }
  0x23   :  { %119 = vperm.xlu0 %633, %v49_v29  }
  0x26   :  { %134 = vperm.xlu1 %634, %v52_v30  }
  0x27   :  { %129 = vperm.xlu0 %633, %v51_v31  }
  0x2a   :  { %144 = vperm.xlu1 %634, %v54_v32  }
  0x2b   :  { %139 = vperm.xlu0 %633, %v53_v33  }
  0x2e   :  { %154 = vperm.xlu1 %634, %v56_v34  }
  0x2f   :  { %149 = vperm.xlu0 %633, %v55_v35  }
  0x7f   :  { %v70_v36 = vpop.permute.xlu1 %69 }
  0x82   :  { %v60_v37 = vpop.permute.xlu0 %59 }
  0x83   :  { %v75_v38 = vpop.permute.xlu1 %74 }
  0x86   :  { %v65_v39 = vpop.permute.xlu0 %64 }
  0x8d   :  { %v85_v40 = vpop.permute.xlu1 %84 }
  0x8e   :  { %v80_v41 = vpop.permute.xlu0 %79 }
  0x91   :  { %v95_v42 = vpop.permute.xlu1 %94 }
  0x92   :  { %v90_v43 = vpop.permute.xlu0 %89 }
  0x95   :  { %v795_v44 = vpop.permute.xlu1 %104 }
  0x96   :  { %v797_v45 = vpop.permute.xlu0 %99 }
  0x99   :  { %v115_v46 = vpop.permute.xlu1 %114 }
  0x9a   :  { %v110_v47 = vpop.permute.xlu0 %109 }
  0x9d   :  { %v125_v48 = vpop.permute.xlu1 %124 }
  0x9e   :  { %v120_v49 = vpop.permute.xlu0 %119 }
  0xa1   :  { %v135_v50 = vpop.permute.xlu1 %134 }
  0xa2   :  { %v130_v51 = vpop.permute.xlu0 %129 }
  0xa5   :  { %v145_v58 = vpop.permute.xlu1 %144 }
  0xa6   :  { %v140_v59 = vpop.permute.xlu0 %139 }
  0xa9   :  { %v155_v14 = vpop.permute.xlu1 %154 }
  0xaa   :  { %v150_v15 = vpop.permute.xlu0 %149 }
  0xc9   :  { %v608_v52 = vpop.f32.mrf.mxu0  ;;  %v620_v53 = vpop.f32.mrf.mxu1 }
  0xca   :  { %v288_v60 = vadd.f32 %v608_v52, %v70_v36  ;;  %v336_v61 = vadd.f32 %v620_v53, %v130_v51 }
  0xcb   :  { %v279_v54 = vpop.f32.mrf.mxu0  ;;  %v327_v55 = vpop.f32.mrf.mxu1 }
  0xcc   :  { %v280_v0 = vadd.f32 %v279_v54, %v60_v37  ;;  %v328_v1 = vadd.f32 %v327_v55, %v120_v49 }
  0xcd   :  { %v609_v56 = vpop.f32.mrf.mxu0  ;;  %v621_v57 = vpop.f32.mrf.mxu1 }
  0xce   :  { %v291_v62 = vadd.f32 %v609_v56, %v75_v38  ;;  %v339_v63 = vadd.f32 %v621_v57, %v135_v50 }
  0xcf   :  { %v282_v2 = vpop.f32.mrf.mxu0  ;;  %v330_v3 = vpop.f32.mrf.mxu1 }
  0xd0   :  { %v542_v4 = vpack.c.bf16 %v291_v62, %v288_v60  ;;  %v572_v5 = vpack.c.bf16 %v339_v63, %v336_v61  ;;  %v283_v6 = vadd.f32 %v282_v2, %v65_v39  ;;  %v331_v7 = vadd.f32 %v330_v3, %v125_v48 }
  0xd1   :  { %v612_v8 = vpop.f32.mrf.mxu0  ;;  %v624_v9 = vpop.f32.mrf.mxu1 }
  0xd2   :  { %584 = vst [vmem:[#allocation2 + $0x8] sm:$0xff] %v542_v4   ;;  %590 = vst [vmem:[#allocation2 + $0x38] sm:$0xff] %v572_v5   ;;  %v537_v10 = vpack.c.bf16 %v283_v6, %v280_v0  ;;  %v567_v11 = vpack.c.bf16 %v331_v7, %v328_v1  ;;  %v304_v18 = vadd.f32 %v612_v8, %v90_v43 }
  0xd3   :  { %v295_v12 = vpop.f32.mrf.mxu0  ;;  %v343_v13 = vpop.f32.mrf.mxu1  ;;  %v352_v19 = vadd.f32 %v624_v9, %v150_v15 }
  0xd4   :  { %538 = vst [vmem:[#allocation2] sm:$0xff] %v537_v10   ;;  %589 = vst [vmem:[#allocation2 + $0x30] sm:$0xff] %v567_v11   ;;  %v296_v22 = vadd.f32 %v295_v12, %v80_v41  ;;  %v344_v23 = vadd.f32 %v343_v13, %v140_v59 }
  0xd5   :  { %v613_v16 = vpop.f32.mrf.mxu0  ;;  %v625_v17 = vpop.f32.mrf.mxu1 }
  0xd6   :  { %v307_v20 = vadd.f32 %v613_v16, %v95_v42  ;;  %v355_v21 = vadd.f32 %v625_v17, %v155_v14 }
  0xd7   :  { %v298_v24 = vpop.f32.mrf.mxu0  ;;  %v346_v25 = vpop.f32.mrf.mxu1 }
  0xd8   :  { %v552_v26 = vpack.c.bf16 %v307_v20, %v304_v18  ;;  %v582_v27 = vpack.c.bf16 %v355_v21, %v352_v19  ;;  %v299_v28 = vadd.f32 %v298_v24, %v85_v40  ;;  %v347_v29 = vadd.f32 %v346_v25, %v145_v58 }
  0xd9   :  { %v616_v30 = vpop.f32.mrf.mxu0 }
  0xda   :  { %586 = vst [vmem:[#allocation2 + $0x18] sm:$0xff] %v552_v26   ;;  %592 = vst [vmem:[#allocation2 + $0x48] sm:$0xff] %v582_v27   ;;  %v547_v31 = vpack.c.bf16 %v299_v28, %v296_v22  ;;  %v577_v32 = vpack.c.bf16 %v347_v29, %v344_v23  ;;  %v320_v35 = vadd.f32 %v616_v30, %v110_v47 }
  0xdb   :  { %v311_v33 = vpop.f32.mrf.mxu0 }
  0xdc   :  { %585 = vst [vmem:[#allocation2 + $0x10] sm:$0xff] %v547_v31   ;;  %591 = vst [vmem:[#allocation2 + $0x40] sm:$0xff] %v577_v32   ;;  %v312_v38 = vadd.f32 %v311_v33, %v797_v45 }
  0xdd   :  { %v617_v34 = vpop.f32.mrf.mxu0 }
  0xde   :  { %v323_v36 = vadd.f32 %v617_v34, %v115_v46 }
  0xdf   :  { %v314_v37 = vpop.f32.mrf.mxu0 }
  0xe0   :  { %v562_v39 = vpack.c.bf16 %v323_v36, %v320_v35  ;;  %v315_v40 = vadd.f32 %v314_v37, %v795_v44 }
  0xe2   :  { %588 = vst [vmem:[#allocation2 + $0x28] sm:$0xff] %v562_v39   ;;  %v557_v41 = vpack.c.bf16 %v315_v40, %v312_v38 }
  0xe4   :  { %587 = vst [vmem:[#allocation2 + $0x20] sm:$0xff] %v557_v41  }
  0xe5   :  { %656 = shalt.err (!%p653_p4)
}
  0xe6   :  { %s670_s19 = smov 64   ;;  %s671_s0 = smov 4  }
  0xe7   :  { %469 = dma.vmem_to_hbm [thread:$0]  %s464_s17, 1280, %s807_s3, [#allocation3], %s670_s19, %s670_s19, %s671_s0  }
  0xe8   :  { %665 = dma.done.wait [#allocation3], 1280  }
  0xe9   :  { %666 = vsyncadd [#allocation3], 4294966016 }
  0xea   :  { %473 = vsyncpa [#allocation3], 1 }

</bundles_post_ra>
